<compile_context>
chip_gen: v6e
topology: v6e:2x2x1
jax: 0.10.0
libtpu: 0.0.40
codegen_flags: <defaults>
</compile_context>

<pallas_src>
import jax
import jax.numpy as jnp
from jax.experimental import pallas as pl
from jax.experimental.pallas import tpu as pltpu


_LANE = 128  # lane width / MXU tile width; hidden dims are padded to this


def _round_up(n, m):
    return ((n + m - 1) // m) * m


def _net_kernel(x_ref,
                w1_ref, sh1_ref,
                w2_ref, sh2_ref,
                w3_ref, sh3_ref,
                w4_ref, b4_ref,
                out_ref):
    """One batch tile: 4 MXU matmuls + f32 epilogue + lane-dense packed store."""
    # Cast to bf16 in-kernel (kernel is mem-bound; VPU has slack).
    x = x_ref[...].astype(jnp.bfloat16)                               # [tb, F]

    # Layer 1: fc1 (BN scale folded into weights) + shift + ReLU.
    h = jnp.dot(x, w1_ref[...], preferred_element_type=jnp.float32)   # [tb,128]
    h = jnp.maximum(h + sh1_ref[...], 0.0)

    # Layer 2: hidden 64 zero-padded to 128 (padded shift == 0 keeps pads at 0).
    h = jnp.dot(h.astype(jnp.bfloat16), w2_ref[...],
                preferred_element_type=jnp.float32)
    h = jnp.maximum(h + sh2_ref[...], 0.0)

    # Layer 3: hidden 32 zero-padded to 128.
    h = jnp.dot(h.astype(jnp.bfloat16), w3_ref[...],
                preferred_element_type=jnp.float32)
    h = jnp.maximum(h + sh3_ref[...], 0.0)

    # Output projection padded to 128 lanes (real logit lives in column 0).
    logits = jnp.dot(h.astype(jnp.bfloat16), w4_ref[...],
                     preferred_element_type=jnp.float32) + b4_ref[...]  # [tb,128]

    # Pack the logit column lane-dense: transpose each 128x128 row-group on
    # the XLU and take row 0 -> [g, 128] block, g = tb // 128 (static).
    g = out_ref.shape[0]
    rows = []
    for i in range(g):
        blk = logits[i * _LANE:(i + 1) * _LANE, :]        # [128,128] f32
        rows.append(blk.T[0:1, :])                        # column 0, lane-dense
    packed = jnp.concatenate(rows, axis=0)                # [g, 128]

    # Sigmoid only on the real logits (128x less EUP work than pre-packing).
    # sigmoid(z) = 0.5*(tanh(z/2)+1): EUP path, overflow-free.
    out_ref[...] = 0.5 * (jnp.tanh(0.5 * packed) + 1.0)


def net_forward(x, params, *, max_tile=2048, target_steps=2):
    """x: [B, input_size] float32.  Returns [B, 1] float32 (sigmoid output)."""
    x = x.astype(jnp.float32)
    B, F = x.shape

    # Tile selection: tb is a multiple of 128 rows (packed-output groups),
    # capped at max_tile, and chosen so there are >=target_steps grid steps
    # (gives both v7x TensorCores work) without over-padding the batch.
    n_groups = pl.cdiv(B, _LANE)                    # 128-row output groups
    steps = max(target_steps, pl.cdiv(n_groups * _LANE, max_tile))
    steps = min(steps, n_groups)                    # tile >= one 128-row group
    gpt = pl.cdiv(n_groups, steps)                  # groups per tile
    tb = gpt * _LANE                                # rows per tile
    grid = (pl.cdiv(n_groups, gpt),)                # ragged last block is OK

    def tile_map(i):
        return (i, 0)

    def whole_map(i):
        return (0, 0)

    in_specs = [
        pl.BlockSpec((tb, F), tile_map),            # x tile (unpadded features)
        pl.BlockSpec((F, _LANE), whole_map),        # w1 (VMEM-resident)
        pl.BlockSpec((1, _LANE), whole_map),        # shift1
        pl.BlockSpec((_LANE, _LANE), whole_map),    # w2
        pl.BlockSpec((1, _LANE), whole_map),        # shift2
        pl.BlockSpec((_LANE, _LANE), whole_map),    # w3
        pl.BlockSpec((1, _LANE), whole_map),        # shift3
        pl.BlockSpec((_LANE, _LANE), whole_map),    # w4 (padded, col 0 real)
        pl.BlockSpec((1, _LANE), whole_map),        # b4 (padded)
    ]

    out = pl.pallas_call(
        _net_kernel,
        out_shape=jax.ShapeDtypeStruct((n_groups, _LANE), jnp.float32),
        grid=grid,
        in_specs=in_specs,
        out_specs=pl.BlockSpec((gpt, _LANE), tile_map),
        compiler_params=pltpu.CompilerParams(
            dimension_semantics=("parallel",),      # megacore on v7x
            vmem_limit_bytes=32 * 1024 * 1024,      # fits v5e/v6e/v7x
        ),
    )(x,
      params["w1"], params["sh1"],
      params["w2"], params["sh2"],
      params["w3"], params["sh3"],
      params["w4"], params["b4"])

    # Packed [n_groups,128] -> [B,1]; only ~4 B/row of real output traffic.
    return out.reshape(-1)[:B].reshape(B, 1)


def _linear_init(key, fan_in, fan_out):
    """PyTorch nn.Linear default init: U(-1/sqrt(fan_in), 1/sqrt(fan_in))."""
    kw, kb = jax.random.split(key)
    bound = 1.0 / jnp.sqrt(jnp.float32(fan_in))
    w = jax.random.uniform(kw, (fan_in, fan_out), jnp.float32, -bound, bound)
    b = jax.random.uniform(kb, (fan_out,), jnp.float32, -bound, bound)
    return w, b


def make_params(key, input_size):
    """Build deterministic params; fold bias+BatchNorm, pad hidden dims to 128."""
    eps = 1e-5
    k1, k2, k3, k4 = jax.random.split(key, 4)

    layer_dims = [(input_size, 128), (128, 64), (64, 32), (32, 1)]
    layer_keys = [k1, k2, k3, k4]
    # Input dim of layer 1 stays UNPADDED (x is fed raw); later inputs are the
    # 128-padded hidden activations.
    in_pad_dims = [input_size, _LANE, _LANE, _LANE]

    params = {}
    for idx, ((fi, fo), kk, fi_pad) in enumerate(
            zip(layer_dims, layer_keys, in_pad_dims), start=1):
        w, b = _linear_init(kk, fi, fo)
        if idx < 4:
            # BatchNorm1d eval stats at init: gamma=1, beta=0, mean=0, var=1.
            gamma = jnp.ones((fo,), jnp.float32)
            beta = jnp.zeros((fo,), jnp.float32)
            running_mean = jnp.zeros((fo,), jnp.float32)
            running_var = jnp.ones((fo,), jnp.float32)
            scale = gamma / jnp.sqrt(running_var + eps)
            w_folded = w * scale[None, :]                 # fold BN scale into W
            shift = (b - running_mean) * scale + beta     # fold bias + BN shift
        else:
            w_folded = w
            shift = b

        # Zero-pad to [fi_pad, 128] / [1, 128]; padded shift entries are 0 so
        # ReLU keeps padded columns at exactly 0.
        w_pad = jnp.zeros((fi_pad, _LANE), jnp.float32).at[:fi, :fo].set(w_folded)
        sh_pad = jnp.zeros((1, _LANE), jnp.float32).at[0, :fo].set(shift)

        params[f"w{idx}"] = w_pad.astype(jnp.bfloat16)      # bf16 on the MXU
        params[f"sh{idx}" if idx < 4 else "b4"] = sh_pad    # f32 epilogue
    return params


def net_reference(x, params):
    """Pure-JAX mirror of the kernel math (bf16 matmul inputs, f32 accum)."""
    xb = x.astype(jnp.bfloat16)

    def mm(a_bf16, w_bf16):
        return jnp.dot(a_bf16.astype(jnp.float32), w_bf16.astype(jnp.float32),
                       precision=jax.lax.Precision.HIGHEST)

    h = jnp.maximum(mm(xb, params["w1"]) + params["sh1"], 0.0)
    h = jnp.maximum(mm(h.astype(jnp.bfloat16), params["w2"]) + params["sh2"], 0.0)
    h = jnp.maximum(mm(h.astype(jnp.bfloat16), params["w3"]) + params["sh3"], 0.0)
    logits = mm(h.astype(jnp.bfloat16), params["w4"]) + params["b4"]
    return 0.5 * (jnp.tanh(0.5 * logits[:, 0:1]) + 1.0)


if __name__ == "__main__":
    key = jax.random.PRNGKey(0)
    k_params, k_x = jax.random.split(key)

    input_size = 32
    params = make_params(k_params, input_size)

    # Small shapes: exercise both the single-step ragged tile (B=8) and the
    # multi-step grid with a ragged last block (B=300).
    for batch in (8, 300):
        kx = jax.random.fold_in(k_x, batch)
        x = jax.random.normal(kx, (batch, input_size), jnp.float32)

        out = jax.block_until_ready(net_forward(x, params))
        ref = net_reference(x, params)

        assert out.shape == (batch, 1), out.shape
        assert jnp.allclose(out, ref, atol=1e-3, rtol=1e-3), \
            f"mismatch vs reference at batch={batch}"

    print("KERNEL_OK")
</pallas_src>

<mosaic_0001>
module attributes {stable_mosaic.version = 11 : i64} {
  func.func @_net_kernel(%arg0: i32, %arg1: memref<128x32xf32, #tpu.memory_space<vmem>>, %arg2: memref<32x128xbf16, #tpu.memory_space<vmem>>, %arg3: memref<1x128xf32, #tpu.memory_space<vmem>>, %arg4: memref<128x128xbf16, #tpu.memory_space<vmem>>, %arg5: memref<1x128xf32, #tpu.memory_space<vmem>>, %arg6: memref<128x128xbf16, #tpu.memory_space<vmem>>, %arg7: memref<1x128xf32, #tpu.memory_space<vmem>>, %arg8: memref<128x128xbf16, #tpu.memory_space<vmem>>, %arg9: memref<1x128xf32, #tpu.memory_space<vmem>>, %arg10: memref<1x128xf32, #tpu.memory_space<vmem>>) attributes {dimension_semantics = [#tpu.dimension_semantics<parallel>], iteration_bounds = array<i64: 1>, scalar_prefetch = 0 : i64, scratch_operands = 0 : i64, tpu.core_type = #tpu.core_type<tc>, window_params = [{transform_indices = @transform_0, window_bounds = array<i64: 128, 32>}, {pipeline_mode = #tpu.pipeline_mode<synchronous>, transform_indices = @transform_1, window_bounds = array<i64: 32, 128>}, {pipeline_mode = #tpu.pipeline_mode<synchronous>, transform_indices = @transform_2, window_bounds = array<i64: 1, 128>}, {pipeline_mode = #tpu.pipeline_mode<synchronous>, transform_indices = @transform_3, window_bounds = array<i64: 128, 128>}, {pipeline_mode = #tpu.pipeline_mode<synchronous>, transform_indices = @transform_4, window_bounds = array<i64: 1, 128>}, {pipeline_mode = #tpu.pipeline_mode<synchronous>, transform_indices = @transform_5, window_bounds = array<i64: 128, 128>}, {pipeline_mode = #tpu.pipeline_mode<synchronous>, transform_indices = @transform_6, window_bounds = array<i64: 1, 128>}, {pipeline_mode = #tpu.pipeline_mode<synchronous>, transform_indices = @transform_7, window_bounds = array<i64: 128, 128>}, {pipeline_mode = #tpu.pipeline_mode<synchronous>, transform_indices = @transform_8, window_bounds = array<i64: 1, 128>}, {transform_indices = @transform_9, window_bounds = array<i64: 1, 128>}]} {
    %c0 = arith.constant 0 : index
    %c0_0 = arith.constant 0 : index
    %0 = vector.load %arg1[%c0, %c0_0] : memref<128x32xf32, #tpu.memory_space<vmem>>, vector<128x32xf32>
    %1 = arith.truncf %0 : vector<128x32xf32> to vector<128x32xbf16>
    %c0_1 = arith.constant 0 : index
    %c0_2 = arith.constant 0 : index
    %2 = vector.load %arg2[%c0_1, %c0_2] : memref<32x128xbf16, #tpu.memory_space<vmem>>, vector<32x128xbf16>
    %cst = arith.constant dense<0.000000e+00> : vector<128x128xf32>
    %3 = tpu.matmul %1, %2, %cst {dimension_numbers = #tpu.dot_dimension_numbers<[1], [0], [0], [1], [0, 0, 1, 1], [], []>} : vector<128x32xbf16>, vector<32x128xbf16>, vector<128x128xf32> -> vector<128x128xf32>
    %c0_3 = arith.constant 0 : index
    %c0_4 = arith.constant 0 : index
    %4 = vector.load %arg3[%c0_3, %c0_4] : memref<1x128xf32, #tpu.memory_space<vmem>>, vector<1x128xf32>
    %5 = vector.broadcast %4 : vector<1x128xf32> to vector<128x128xf32>
    %6 = arith.addf %3, %5 : vector<128x128xf32>
    %cst_5 = arith.constant 0.000000e+00 : f32
    %7 = vector.broadcast %cst_5 : f32 to vector<128x128xf32>
    %8 = arith.maximumf %6, %7 : vector<128x128xf32>
    %9 = arith.truncf %8 : vector<128x128xf32> to vector<128x128xbf16>
    %c0_6 = arith.constant 0 : index
    %c0_7 = arith.constant 0 : index
    %10 = vector.load %arg4[%c0_6, %c0_7] : memref<128x128xbf16, #tpu.memory_space<vmem>>, vector<128x128xbf16>
    %cst_8 = arith.constant dense<0.000000e+00> : vector<128x128xf32>
    %11 = tpu.matmul %9, %10, %cst_8 {dimension_numbers = #tpu.dot_dimension_numbers<[1], [0], [0], [1], [0, 0, 1, 1], [], []>} : vector<128x128xbf16>, vector<128x128xbf16>, vector<128x128xf32> -> vector<128x128xf32>
    %c0_9 = arith.constant 0 : index
    %c0_10 = arith.constant 0 : index
    %12 = vector.load %arg5[%c0_9, %c0_10] : memref<1x128xf32, #tpu.memory_space<vmem>>, vector<1x128xf32>
    %13 = vector.broadcast %12 : vector<1x128xf32> to vector<128x128xf32>
    %14 = arith.addf %11, %13 : vector<128x128xf32>
    %cst_11 = arith.constant 0.000000e+00 : f32
    %15 = vector.broadcast %cst_11 : f32 to vector<128x128xf32>
    %16 = arith.maximumf %14, %15 : vector<128x128xf32>
    %17 = arith.truncf %16 : vector<128x128xf32> to vector<128x128xbf16>
    %c0_12 = arith.constant 0 : index
    %c0_13 = arith.constant 0 : index
    %18 = vector.load %arg6[%c0_12, %c0_13] : memref<128x128xbf16, #tpu.memory_space<vmem>>, vector<128x128xbf16>
    %cst_14 = arith.constant dense<0.000000e+00> : vector<128x128xf32>
    %19 = tpu.matmul %17, %18, %cst_14 {dimension_numbers = #tpu.dot_dimension_numbers<[1], [0], [0], [1], [0, 0, 1, 1], [], []>} : vector<128x128xbf16>, vector<128x128xbf16>, vector<128x128xf32> -> vector<128x128xf32>
    %c0_15 = arith.constant 0 : index
    %c0_16 = arith.constant 0 : index
    %20 = vector.load %arg7[%c0_15, %c0_16] : memref<1x128xf32, #tpu.memory_space<vmem>>, vector<1x128xf32>
    %21 = vector.broadcast %20 : vector<1x128xf32> to vector<128x128xf32>
    %22 = arith.addf %19, %21 : vector<128x128xf32>
    %cst_17 = arith.constant 0.000000e+00 : f32
    %23 = vector.broadcast %cst_17 : f32 to vector<128x128xf32>
    %24 = arith.maximumf %22, %23 : vector<128x128xf32>
    %25 = arith.truncf %24 : vector<128x128xf32> to vector<128x128xbf16>
    %c0_18 = arith.constant 0 : index
    %c0_19 = arith.constant 0 : index
    %26 = vector.load %arg8[%c0_18, %c0_19] : memref<128x128xbf16, #tpu.memory_space<vmem>>, vector<128x128xbf16>
    %cst_20 = arith.constant dense<0.000000e+00> : vector<128x128xf32>
    %27 = tpu.matmul %25, %26, %cst_20 {dimension_numbers = #tpu.dot_dimension_numbers<[1], [0], [0], [1], [0, 0, 1, 1], [], []>} : vector<128x128xbf16>, vector<128x128xbf16>, vector<128x128xf32> -> vector<128x128xf32>
    %c0_21 = arith.constant 0 : index
    %c0_22 = arith.constant 0 : index
    %28 = vector.load %arg9[%c0_21, %c0_22] : memref<1x128xf32, #tpu.memory_space<vmem>>, vector<1x128xf32>
    %29 = vector.broadcast %28 : vector<1x128xf32> to vector<128x128xf32>
    %30 = arith.addf %27, %29 : vector<128x128xf32>
    %31 = tpu.transpose %30, [1, 0] : vector<128x128xf32> -> vector<128x128xf32>
    %32 = vector.extract_strided_slice %31 {offsets = [0, 0], sizes = [1, 128], strides = [1, 1]} : vector<128x128xf32> to vector<1x128xf32>
    %cst_23 = arith.constant 5.000000e-01 : f32
    %33 = vector.broadcast %cst_23 : f32 to vector<1x128xf32>
    %34 = arith.mulf %33, %32 : vector<1x128xf32>
    %35 = math.tanh %34 : vector<1x128xf32>
    %cst_24 = arith.constant 1.000000e+00 : f32
    %36 = vector.broadcast %cst_24 : f32 to vector<1x128xf32>
    %37 = arith.addf %35, %36 : vector<1x128xf32>
    %cst_25 = arith.constant 5.000000e-01 : f32
    %38 = vector.broadcast %cst_25 : f32 to vector<1x128xf32>
    %39 = arith.mulf %38, %37 : vector<1x128xf32>
    %c0_26 = arith.constant 0 : index
    %c0_27 = arith.constant 0 : index
    %40 = vector.load %arg10[%c0_26, %c0_27] : memref<1x128xf32, #tpu.memory_space<vmem>>, vector<1x128xf32>
    tpu.vector_store %arg10[%c0_26, %c0_27], %39 {strides = array<i32>} : memref<1x128xf32, #tpu.memory_space<vmem>>, vector<1x128xf32>,
    return
  }
  func.func @transform_0(%arg0: i32) -> (i32, i32) {
    %c0_i32 = arith.constant 0 : i32
    %c0_i32_0 = arith.constant 0 : i32
    return %arg0, %c0_i32 : i32, i32
  }
  func.func @transform_1(%arg0: i32) -> (i32, i32) {
    %c0_i32 = arith.constant 0 : i32
    %c0_i32_0 = arith.constant 0 : i32
    %c0_i32_1 = arith.constant 0 : i32
    return %c0_i32, %c0_i32_0 : i32, i32
  }
  func.func @transform_2(%arg0: i32) -> (i32, i32) {
    %c0_i32 = arith.constant 0 : i32
    %c0_i32_0 = arith.constant 0 : i32
    %c0_i32_1 = arith.constant 0 : i32
    return %c0_i32, %c0_i32_0 : i32, i32
  }
  func.func @transform_3(%arg0: i32) -> (i32, i32) {
    %c0_i32 = arith.constant 0 : i32
    %c0_i32_0 = arith.constant 0 : i32
    %c0_i32_1 = arith.constant 0 : i32
    return %c0_i32, %c0_i32_0 : i32, i32
  }
  func.func @transform_4(%arg0: i32) -> (i32, i32) {
    %c0_i32 = arith.constant 0 : i32
    %c0_i32_0 = arith.constant 0 : i32
    %c0_i32_1 = arith.constant 0 : i32
    return %c0_i32, %c0_i32_0 : i32, i32
  }
  func.func @transform_5(%arg0: i32) -> (i32, i32) {
    %c0_i32 = arith.constant 0 : i32
    %c0_i32_0 = arith.constant 0 : i32
    %c0_i32_1 = arith.constant 0 : i32
    return %c0_i32, %c0_i32_0 : i32, i32
  }
  func.func @transform_6(%arg0: i32) -> (i32, i32) {
    %c0_i32 = arith.constant 0 : i32
    %c0_i32_0 = arith.constant 0 : i32
    %c0_i32_1 = arith.constant 0 : i32
    return %c0_i32, %c0_i32_0 : i32, i32
  }
  func.func @transform_7(%arg0: i32) -> (i32, i32) {
    %c0_i32 = arith.constant 0 : i32
    %c0_i32_0 = arith.constant 0 : i32
    %c0_i32_1 = arith.constant 0 : i32
    return %c0_i32, %c0_i32_0 : i32, i32
  }
  func.func @transform_8(%arg0: i32) -> (i32, i32) {
    %c0_i32 = arith.constant 0 : i32
    %c0_i32_0 = arith.constant 0 : i32
    %c0_i32_1 = arith.constant 0 : i32
    return %c0_i32, %c0_i32_0 : i32, i32
  }
  func.func @transform_9(%arg0: i32) -> (i32, i32) {
    %c0_i32 = arith.constant 0 : i32
    %c0_i32_0 = arith.constant 0 : i32
    return %arg0, %c0_i32 : i32, i32
  }
}

</mosaic_0001>

<bundles_post_ra>
// kernel: tpu_custom_call.1
= control target key start
LH: loop header
LB: loop body
LE: loop exit
PB: predicated region body
PF: predicated region fallthrough
CT: control target
= control target key end

     0   :  { %14 = vsyncpa [#allocation3], 0  ;;  %s1435_s0 = inlined_call_operand.hbm [shape: f32[8,32], index: 0, kind: input, shape index: {}]   ;;  %s1436_s1 = inlined_call_operand.hbm [shape: bf16[32,128], index: 1, kind: input, shape index: {}]   ;;  %s1437_s2 = inlined_call_operand.vmem [shape: f32[1,128], index: 2, kind: input, shape index: {}]   ;;  %s1438_s3 = inlined_call_operand.hbm [shape: bf16[128,128], index: 3, kind: input, shape index: {}]   ;;  %s1439_s4 = inlined_call_operand.vmem [shape: f32[1,128], index: 4, kind: input, shape index: {}]   ;;  %s1440_s5 = inlined_call_operand.hbm [shape: bf16[128,128], index: 5, kind: input, shape index: {}]   ;;  %s1441_s6 = inlined_call_operand.vmem [shape: f32[1,128], index: 6, kind: input, shape index: {}]   ;;  %s1442_s7 = inlined_call_operand.hbm [shape: bf16[128,128], index: 7, kind: input, shape index: {}]   ;;  %s1443_s8 = inlined_call_operand.vmem [shape: f32[1,128], index: 8, kind: input, shape index: {}]   ;;  %s1444_s9 = inlined_call_operand.hbm [shape: f32[1,128], index: 9, kind: output, shape index: {}]  }
   0x1   :  { %15 = vsyncpa [#allocation6], 0 }
   0x2   :  { %16 = vsyncpa [#allocation9], 0 }
   0x3   :  { %17 = vsyncpa [#allocation4], 0 }
   0x4   :  { %22 = vsyncadd [#allocation3], 1920  ;;  %s1295_s30 = smov [#allocation5]  }
   0x5   :  { %s35_s10 = sshll.u32 %s1295_s30, 4  ;;  %s36_s10 = int_to_ptr.vmem [resolvable:$true] %s35_s10 }
   0x6   :  { %s1175_s11 = scalar_lea.vmem %s36_s10, 256  ;;  %p1180_p1 = scmp.lt.s32.totalorder %s36_s10, %s36_s10 }
   0x7   :  { %p1176_p0 = scmp.ne.s32.totalorder %s36_s10, %s1175_s11  ;;  %p1181_p2 = scmp.lt.s32.totalorder %s1175_s11, %s1175_s11 }
   0x9   :  { %p1182_p3 = por %p1181_p2, %p1180_p1 }
   0xb   :  { %p1183_p4 = pnand %p1182_p3, %p1176_p0 }
   0xd   :  { %1186 = shalt.err (!%p1183_p4)
}
   0xe   :  { %s1296_s12 = smov 64   ;;  %s1297_s13 = smov 4  }
   0xf   :  { %41 = dma.hbm_to_vmem [thread:$0]  %s1436_s1, 256, %s36_s10, [#allocation6], %s1296_s12, %s1296_s12, %s1297_s13  }
  0x10   :  { %s1298_s16 = smov [#allocation8]   ;;  %s1299_s18 = smov [#allocation2]  }
  0x11   :  { %s63_s17 = sshll.u32 %s1298_s16, 4  ;;  %s23_s19 = sshll.u32 %s1299_s18, 4  ;;  %s64_s17 = int_to_ptr.vmem [resolvable:$true] %s63_s17  ;;  %s24_s19 = int_to_ptr.vmem [resolvable:$true] %s23_s19 }
  0x12   :  { %s1195_s20 = scalar_lea.vmem %s64_s17, 1024  ;;  %p1200_p6 = scmp.lt.s32.totalorder %s64_s17, %s64_s17 }
  0x13   :  { %p1196_p5 = scmp.ne.s32.totalorder %s64_s17, %s1195_s20  ;;  %p1201_p7 = scmp.lt.s32.totalorder %s1195_s20, %s1195_s20 }
  0x15   :  { %p1202_p8 = por %p1201_p7, %p1200_p6 }
  0x17   :  { %p1203_p9 = pnand %p1202_p8, %p1196_p5 }
  0x19   :  { %1206 = shalt.err (!%p1203_p9)
}
  0x1a   :  { %69 = dma.hbm_to_vmem [thread:$0]  %s1440_s5, 1024, %s64_s17, [#allocation9], %s1296_s12, %s1296_s12, %s1297_s13  }
  0x1b   :  { %s1215_s1 = scalar_lea.vmem %s24_s19, 128  ;;  %s1219_s23 = scalar_lea.vmem %s24_s19, 2048 }
  0x1c   :  { %p1216_p10 = scmp.ne.s32.totalorder %s24_s19, %s1215_s1  ;;  %p1220_p11 = scmp.lt.s32.totalorder %s24_s19, %s24_s19 }
  0x1d   :  { %p1221_p12 = scmp.lt.s32.totalorder %s1219_s23, %s1215_s1 }
  0x1f   :  { %p1222_p13 = por %p1221_p12, %p1220_p11 }
  0x21   :  { %p1223_p0 = pnand %p1222_p13, %p1216_p10 }
  0x23   :  { %1226 = shalt.err (!%p1223_p0)
}
  0x24   :  { %s1300_s24 = smov 128   ;;  %s1301_s25 = smov 8  }
  0x25   :  { %29 = dma.hbm_to_vmem [thread:$0]  %s1435_s0, 128, %s24_s19, [#allocation3], %s1300_s24, %s1300_s24, %s1301_s25  }
  0x26   :  { %s1302_s28 = smov [#allocation7]   ;;  %s1303_s30 = smov [#allocation10]  }
  0x27   :  { %s49_s29 = sshll.u32 %s1302_s28, 4  ;;  %s77_s5 = sshll.u32 %s1303_s30, 4  ;;  %s50_s29 = int_to_ptr.vmem [resolvable:$true] %s49_s29  ;;  %s78_s5 = int_to_ptr.vmem [resolvable:$true] %s77_s5 }
  0x28   :  { %s1235_s10 = scalar_lea.vmem %s50_s29, 1024  ;;  %p1240_p2 = scmp.lt.s32.totalorder %s50_s29, %s50_s29 }
  0x29   :  { %p1236_p1 = scmp.ne.s32.totalorder %s50_s29, %s1235_s10  ;;  %p1241_p3 = scmp.lt.s32.totalorder %s1235_s10, %s1235_s10 }
  0x2b   :  { %p1242_p4 = por %p1241_p3, %p1240_p2 }
  0x2d   :  { %p1243_p5 = pnand %p1242_p4, %p1236_p1 }
  0x2f   :  { %1246 = shalt.err (!%p1243_p5)
}
  0x30   :  { %55 = dma.hbm_to_vmem [thread:$0]  %s1438_s3, 1024, %s50_s29, [#allocation6], %s1296_s12, %s1296_s12, %s1297_s13  }
  0x31   :  { %s1255_s0 = scalar_lea.vmem %s78_s5, 1024  ;;  %p1260_p7 = scmp.lt.s32.totalorder %s78_s5, %s78_s5 }
  0x32   :  { %p1256_p6 = scmp.ne.s32.totalorder %s78_s5, %s1255_s0  ;;  %p1261_p8 = scmp.lt.s32.totalorder %s1255_s0, %s1255_s0 }
  0x34   :  { %p1262_p9 = por %p1261_p8, %p1260_p7 }
  0x36   :  { %p1263_p10 = pnand %p1262_p9, %p1256_p6 }
  0x38   :  { %1266 = shalt.err (!%p1263_p10)
}
  0x39   :  { %83 = dma.hbm_to_vmem [thread:$0]  %s1442_s7, 1024, %s78_s5, [#allocation9], %s1296_s12, %s1296_s12, %s1297_s13  }
  0x3a   :  { %1287 = dma.done.wait [#allocation3], 2048  }
  0x3b   :  { %1288 = vsyncadd [#allocation3], 4294965248 }
  0x3c   :  { %1289 = dma.done.wait [#allocation6], 1280  }
  0x3d   :  { %1290 = vsyncadd [#allocation6], 4294966016 }
  0x3e   :  { %1291 = dma.done.wait [#allocation9], 2048  }
  0x3f   :  { %1292 = vsyncadd [#allocation9], 4294965248  ;;  %v1139_v0 = vld [vmem:[#allocation5 + $0x8] sm:$0xff]   ;;  %v1140_v1 = vld [vmem:[#allocation5] sm:$0xff]   ;;  %vm149_vm0 = vcmask 261120  }
  0x40   :  { %997 = vmatprep.subr.bf16.mxu0 %v1139_v0  ;;  %v102_v2 = vld [vmem:[#allocation2] sm:$0xff]  ;;  %v103_v3 = vld [vmem:[#allocation2 + $0x8] sm:$0xff]  ;;  %v104_v5 = vld [vmem:[#allocation2 + $0x10] sm:$0xff] }
  0x41   :  { %998 = vmatpush3.bf16.msra.mxu0 %v1139_v0  ;;  %v118_v4 = vpack.c.bf16 %v103_v3, %v102_v2  ;;  %v105_v6 = vld [vmem:[#allocation2 + $0x18] sm:$0xff]  ;;  %v106_v7 = vld [vmem:[#allocation2 + $0x20] sm:$0xff]  ;;  %v107_v8 = vld [vmem:[#allocation2 + $0x28] sm:$0xff] }
  0x42   :  { %999 = vmatprep.subr.bf16.mxu0 %v1140_v1  ;;  %v119_v9 = vpack.c.bf16 %v105_v6, %v104_v5  ;;  %v120_v10 = vpack.c.bf16 %v107_v8, %v106_v7  ;;  %v1141_v11 = vld [vmem:[#allocation7 + $0x38] sm:$0xff]   ;;  %v108_v12 = vld [vmem:[#allocation2 + $0x30] sm:$0xff]  ;;  %v109_v13 = vld [vmem:[#allocation2 + $0x38] sm:$0xff] }
  0x43   :  { %1001 = vmatprep.mubr.msk.bf16.mxu0 %vm149_vm0, %v118_v4  ;;  %v1142_v14 = vld [vmem:[#allocation7 + $0x30] sm:$0xff]   ;;  %1017 = vmatprep.subr.bf16.mxu1 %v1141_v11  ;;  %v111_v16 = vld [vmem:[#allocation2 + $0x48] sm:$0xff]  ;;  %v1143_v17 = vld [vmem:[#allocation7 + $0x28] sm:$0xff]   ;;  %v121_v18 = vpack.c.bf16 %v109_v13, %v108_v12 }
  0x44   :  { %v110_v15 = vld [vmem:[#allocation2 + $0x40] sm:$0xff]  ;;  %1018 = vmatpush3.bf16.msra.mxu1 %v1141_v11  ;;  %v1144_v19 = vld [vmem:[#allocation7 + $0x20] sm:$0xff]   ;;  %v113_v22 = vld [vmem:[#allocation2 + $0x58] sm:$0xff] }
  0x45   :  { %1000 = vmatpush3.bf16.msra.mxu0 %v1140_v1  ;;  %1019 = vmatprep.subr.bf16.mxu1 %v1142_v14  ;;  %v122_v20 = vpack.c.bf16 %v111_v16, %v110_v15  ;;  %v112_v21 = vld [vmem:[#allocation2 + $0x50] sm:$0xff]  ;;  %v114_v23 = vld [vmem:[#allocation2 + $0x60] sm:$0xff]  ;;  %v115_v24 = vld [vmem:[#allocation2 + $0x68] sm:$0xff] }
  0x46   :  { %v1145_v25 = vld [vmem:[#allocation7 + $0x18] sm:$0xff]   ;;  %v123_v26 = vpack.c.bf16 %v113_v22, %v112_v21  ;;  %v124_v27 = vpack.c.bf16 %v115_v24, %v114_v23  ;;  %v116_v28 = vld [vmem:[#allocation2 + $0x70] sm:$0xff]  ;;  %v117_v29 = vld [vmem:[#allocation2 + $0x78] sm:$0xff] }
  0x47   :  { %v125_v30 = vpack.c.bf16 %v117_v29, %v116_v28  ;;  %v1146_v31 = vld [vmem:[#allocation7 + $0x10] sm:$0xff]   ;;  %v1147_v32 = vld [vmem:[#allocation7 + $0x8] sm:$0xff]   ;;  %v1148_v33 = vld [vmem:[#allocation7] sm:$0xff]  }
  0x48   :  { %1002 = vmatmul.mubr.msk.bf16.vlgmr.msra.gmra.mxu0 %vm149_vm0, %v119_v9  ;;  %1020 = vmatpush3.bf16.msra.mxu1 %v1142_v14  ;;  %v1149_v34 = vld [vmem:[#allocation8 + $0x38] sm:$0xff]   ;;  %v1150_v35 = vld [vmem:[#allocation8 + $0x30] sm:$0xff]   ;;  %v1151_v36 = vld [vmem:[#allocation8 + $0x28] sm:$0xff]  }
  0x49   :  { %1005 = vmatprep.mubr.msk.bf16.mxu0 %vm149_vm0, %v120_v10  ;;  %1021 = vmatprep.subr.bf16.mxu1 %v1143_v17  ;;  %v1152_v37 = vld [vmem:[#allocation8 + $0x20] sm:$0xff]   ;;  %v1153_v38 = vld [vmem:[#allocation8 + $0x18] sm:$0xff]   ;;  %v901_v41 = vld [vmem:[%s1437_s2] ss:$0 sm:$0xff] }
  0x4a   :  { %1049 = vmatprep.subr.bf16.mxu0 %v1149_v34 }
  0x4b   :  { %1050 = vmatpush3.bf16.msra.mxu0 %v1149_v34  ;;  %v1156_v34 = vld [vmem:[#allocation8] sm:$0xff]  }
  0x4c   :  { %1022 = vmatpush3.bf16.msra.mxu1 %v1143_v17  ;;  %1051 = vmatprep.subr.bf16.mxu0 %v1150_v35 }
  0x4d   :  { %1023 = vmatprep.subr.bf16.mxu1 %v1144_v19 }
  0x4f   :  { %1052 = vmatpush3.bf16.msra.mxu0 %v1150_v35  ;;  %v1157_v35 = vld [vmem:[#allocation10 + $0x38] sm:$0xff]  }
  0x50   :  { %1006 = vmatmul.mubr.msk.bf16.gmra.mxu0 %vm149_vm0, %v121_v18  ;;  %1024 = vmatpush3.bf16.msra.mxu1 %v1144_v19 }
  0x51   :  { %1009 = vmatprep.mubr.msk.bf16.mxu0 %vm149_vm0, %v122_v20  ;;  %1025 = vmatprep.subr.bf16.mxu1 %v1145_v25 }
  0x52   :  { %1053 = vmatprep.subr.bf16.mxu0 %v1151_v36 }
  0x53   :  { %1054 = vmatpush3.bf16.msra.mxu0 %v1151_v36  ;;  %v1158_v36 = vld [vmem:[#allocation10 + $0x30] sm:$0xff]  }
  0x54   :  { %1026 = vmatpush3.bf16.msra.mxu1 %v1145_v25  ;;  %1055 = vmatprep.subr.bf16.mxu0 %v1152_v37 }
  0x55   :  { %1027 = vmatprep.subr.bf16.mxu1 %v1146_v31 }
  0x57   :  { %1056 = vmatpush3.bf16.msra.mxu0 %v1152_v37  ;;  %v1159_v37 = vld [vmem:[#allocation10 + $0x28] sm:$0xff]  }
  0x58   :  { %1010 = vmatmul.mubr.msk.bf16.gmra.mxu0 %vm149_vm0, %v123_v26  ;;  %1028 = vmatpush3.bf16.msra.mxu1 %v1146_v31 }
  0x59   :  { %1013 = vmatprep.mubr.msk.bf16.mxu0 %vm149_vm0, %v124_v27  ;;  %1029 = vmatprep.subr.bf16.mxu1 %v1147_v32 }
  0x5a   :  { %1057 = vmatprep.subr.bf16.mxu0 %v1153_v38 }
  0x5b   :  { %1058 = vmatpush3.bf16.msra.mxu0 %v1153_v38  ;;  %v1393_v38 = vld [vmem:[#allocation10 + $0x20] sm:$0xff]  }
  0x5c   :  { %1030 = vmatpush3.bf16.msra.mxu1 %v1147_v32  ;;  %v1154_v32 = vld [vmem:[#allocation8 + $0x10] sm:$0xff]  }
  0x5d   :  { %1031 = vmatprep.subr.bf16.mxu1 %v1148_v33  ;;  %1059 = vmatprep.subr.bf16.mxu0 %v1154_v32 }
  0x5f   :  { %1060 = vmatpush3.bf16.msra.mxu0 %v1154_v32 }
  0x60   :  { %1014 = vmatmul.mubr.msk.bf16.gmra.mxu0 %vm149_vm0, %v125_v30  ;;  %1032 = vmatpush3.bf16.msra.mxu1 %v1148_v33  ;;  %v1155_v33 = vld [vmem:[#allocation8 + $0x8] sm:$0xff]  }
  0x61   :  { %1061 = vmatprep.subr.bf16.mxu0 %v1155_v33  ;;  %1113 = vmatprep.subr.bf16.mxu1 %v1157_v35 }
  0x63   :  { %1062 = vmatpush3.bf16.msra.mxu0 %v1155_v33  ;;  %v1162_v33 = vld [vmem:[#allocation10 + $0x10] sm:$0xff]  }
  0x64   :  { %1063 = vmatprep.subr.bf16.mxu0 %v1156_v34 }
  0x67   :  { %1064 = vmatpush3.bf16.msra.mxu0 %v1156_v34  ;;  %v1163_v34 = vld [vmem:[#allocation10 + $0x8] sm:$0xff]  }
  0x68   :  { %1081 = vmatprep.subr.bf16.mxu0 %v1157_v35 }
 0x108   :  { %v1003_v39 = vpop.f32.mrf.mxu0 }
 0x109   :  { %v217_v45 = vadd.f32 %v1003_v39, %v901_v41  ;;  %v1396_v39 = vld [vmem:[#allocation10 + $0x18] sm:$0xff]  }
 0x10a   :  { %v208_v40 = vpop.f32.mrf.mxu0 }
 0x10b   :  { %v209_v43 = vadd.f32 %v901_v41, %v208_v40  ;;  %v273_v52 = vmax.f32 %v217_v45, 0.0 }
 0x10c   :  { %v1004_v42 = vpop.f32.mrf.mxu0 }
 0x10d   :  { %v220_v44 = vadd.f32 %v1004_v42, %v901_v41  ;;  %v271_v50 = vmax.f32 %v209_v43, 0.0  ;;  %v1404_v42 = vld [vmem:[%s1439_s4] ss:$0 sm:$0xff] }
 0x10e   :  { %v211_v46 = vpop.f32.mrf.mxu0 }
 0x10f   :  { %v212_v47 = vadd.f32 %v901_v41, %v211_v46  ;;  %v274_v48 = vmax.f32 %v220_v44, 0.0 }
 0x110   :  { %v1007_v49 = vpop.f32.mrf.mxu0 }
 0x111   :  { %v272_v51 = vmax.f32 %v212_v47, 0.0  ;;  %v233_v53 = vadd.f32 %v1007_v49, %v901_v41  ;;  %v288_v57 = vpack.c.bf16 %v274_v48, %v273_v52 }
 0x112   :  { %v224_v54 = vpop.f32.mrf.mxu0 }
 0x113   :  { %v225_v55 = vadd.f32 %v901_v41, %v224_v54  ;;  %v287_v56 = vpack.c.bf16 %v272_v51, %v271_v50  ;;  %v277_v60 = vmax.f32 %v233_v53, 0.0 }
 0x114   :  { %v1008_v58 = vpop.f32.mrf.mxu0 }
 0x115   :  { %v236_v59 = vadd.f32 %v1008_v58, %v901_v41  ;;  %1033 = vmatprep.mubr.bf16.mxu1 %v287_v56  ;;  %v275_v62 = vmax.f32 %v225_v55, 0.0 }
 0x116   :  { %v227_v61 = vpop.f32.mrf.mxu0  ;;  %1034 = vmatmul.mubr.bf16.vlgmr.msra.gmra.mxu1 %v288_v57 }
 0x117   :  { %v278_v63 = vmax.f32 %v236_v59, 0.0  ;;  %v228_v0 = vadd.f32 %v901_v41, %v227_v61  ;;  %1121 = vmatpush3.bf16.msra.mxu1 %v1157_v35 }
 0x118   :  { %v1011_v1 = vpop.f32.mrf.mxu0  ;;  %1114 = vmatprep.subr.bf16.mxu1 %v1158_v36 }
 0x119   :  { %v276_v2 = vmax.f32 %v228_v0, 0.0  ;;  %v290_v3 = vpack.c.bf16 %v278_v63, %v277_v60  ;;  %v249_v4 = vadd.f32 %v1011_v1, %v901_v41 }
 0x11a   :  { %v240_v5 = vpop.f32.mrf.mxu0 }
 0x11b   :  { %v289_v6 = vpack.c.bf16 %v276_v2, %v275_v62  ;;  %v241_v7 = vadd.f32 %v901_v41, %v240_v5  ;;  %v281_v10 = vmax.f32 %v249_v4, 0.0  ;;  %1122 = vmatpush3.bf16.msra.mxu1 %v1158_v36 }
 0x11c   :  { %v1012_v8 = vpop.f32.mrf.mxu0  ;;  %1115 = vmatprep.subr.bf16.mxu1 %v1159_v37 }
 0x11d   :  { %v252_v9 = vadd.f32 %v1012_v8, %v901_v41  ;;  %1037 = vmatprep.mubr.bf16.mxu1 %v289_v6  ;;  %v279_v12 = vmax.f32 %v241_v7, 0.0 }
 0x11e   :  { %v243_v11 = vpop.f32.mrf.mxu0  ;;  %1038 = vmatmul.mubr.bf16.gmra.mxu1 %v290_v3 }
 0x11f   :  { %v282_v13 = vmax.f32 %v252_v9, 0.0  ;;  %v244_v14 = vadd.f32 %v901_v41, %v243_v11  ;;  %1123 = vmatpush3.bf16.msra.mxu1 %v1159_v37 }
 0x120   :  { %v1015_v15 = vpop.f32.mrf.mxu0  ;;  %1116 = vmatprep.subr.bf16.mxu1 %v1393_v38 }
 0x121   :  { %v280_v16 = vmax.f32 %v244_v14, 0.0  ;;  %v292_v17 = vpack.c.bf16 %v282_v13, %v281_v10  ;;  %v265_v18 = vadd.f32 %v1015_v15, %v901_v41 }
 0x122   :  { %v256_v19 = vpop.f32.mrf.mxu0 }
 0x123   :  { %v291_v20 = vpack.c.bf16 %v280_v16, %v279_v12  ;;  %v257_v21 = vadd.f32 %v901_v41, %v256_v19  ;;  %v285_v24 = vmax.f32 %v265_v18, 0.0  ;;  %1124 = vmatpush3.bf16.msra.mxu1 %v1393_v38 }
 0x124   :  { %v1016_v22 = vpop.f32.mrf.mxu0  ;;  %1117 = vmatprep.subr.bf16.mxu1 %v1396_v39 }
 0x125   :  { %v268_v23 = vadd.f32 %v1016_v22, %v901_v41  ;;  %1041 = vmatprep.mubr.bf16.mxu1 %v291_v20  ;;  %v283_v26 = vmax.f32 %v257_v21, 0.0 }
 0x126   :  { %v259_v25 = vpop.f32.mrf.mxu0  ;;  %1042 = vmatmul.mubr.bf16.gmra.mxu1 %v292_v17 }
 0x127   :  { %v286_v27 = vmax.f32 %v268_v23, 0.0  ;;  %v260_v28 = vadd.f32 %v901_v41, %v259_v25  ;;  %1125 = vmatpush3.bf16.msra.mxu1 %v1396_v39 }
 0x128   :  { %1118 = vmatprep.subr.bf16.mxu1 %v1162_v33 }
 0x129   :  { %v284_v29 = vmax.f32 %v260_v28, 0.0  ;;  %v294_v30 = vpack.c.bf16 %v286_v27, %v285_v24 }
 0x12b   :  { %v293_v31 = vpack.c.bf16 %v284_v29, %v283_v26  ;;  %1126 = vmatpush3.bf16.msra.mxu1 %v1162_v33 }
 0x12c   :  { %1119 = vmatprep.subr.bf16.mxu1 %v1163_v34 }
 0x12d   :  { %1045 = vmatprep.mubr.bf16.mxu1 %v293_v31 }
 0x12e   :  { %1046 = vmatmul.mubr.bf16.gmra.mxu1 %v294_v30 }
 0x12f   :  { %1127 = vmatpush3.bf16.msra.mxu1 %v1163_v34 }
 0x1d6   :  { %v1035_v40 = vpop.f32.mrf.mxu1 }
 0x1d7   :  { %v409_v46 = vadd.f32 %v1035_v40, %v1404_v42 }
 0x1d8   :  { %v400_v41 = vpop.f32.mrf.mxu1 }
 0x1d9   :  { %v401_v44 = vadd.f32 %v1404_v42, %v400_v41  ;;  %v465_v53 = vmax.f32 %v409_v46, 0.0 }
 0x1da   :  { %v1036_v43 = vpop.f32.mrf.mxu1 }
 0x1db   :  { %v412_v45 = vadd.f32 %v1036_v43, %v1404_v42  ;;  %v463_v51 = vmax.f32 %v401_v44, 0.0 }
 0x1dc   :  { %v403_v47 = vpop.f32.mrf.mxu1 }
 0x1dd   :  { %v404_v48 = vadd.f32 %v1404_v42, %v403_v47  ;;  %v466_v49 = vmax.f32 %v412_v45, 0.0 }
 0x1de   :  { %v1039_v50 = vpop.f32.mrf.mxu1 }
 0x1df   :  { %v464_v52 = vmax.f32 %v404_v48, 0.0  ;;  %v480_v56 = vpack.c.bf16 %v466_v49, %v465_v53  ;;  %v425_v60 = vadd.f32 %v1039_v50, %v1404_v42 }
 0x1e0   :  { %v416_v54 = vpop.f32.mrf.mxu1 }
 0x1e1   :  { %v479_v55 = vpack.c.bf16 %v464_v52, %v463_v51  ;;  %v417_v58 = vadd.f32 %v1404_v42, %v416_v54  ;;  %v469_v3 = vmax.f32 %v425_v60, 0.0 }
 0x1e2   :  { %v1040_v57 = vpop.f32.mrf.mxu1 }
 0x1e3   :  { %v428_v59 = vadd.f32 %v1040_v57, %v1404_v42  ;;  %1065 = vmatprep.mubr.bf16.mxu0 %v479_v55  ;;  %v467_v1 = vmax.f32 %v417_v58, 0.0 }
 0x1e4   :  { %v419_v61 = vpop.f32.mrf.mxu1  ;;  %1066 = vmatmul.mubr.bf16.vlgmr.msra.gmra.mxu0 %v480_v56 }
 0x1e5   :  { %v420_v62 = vadd.f32 %v1404_v42, %v419_v61  ;;  %1082 = vmatpush3.bf16.msra.mxu0 %v1157_v35  ;;  %v470_v63 = vmax.f32 %v428_v59, 0.0  ;;  %v1164_v35 = vld [vmem:[#allocation10] sm:$0xff]  }
 0x1e6   :  { %v1043_v0 = vpop.f32.mrf.mxu1  ;;  %1083 = vmatprep.subr.bf16.mxu0 %v1158_v36  ;;  %1120 = vmatprep.subr.bf16.mxu1 %v1164_v35 }
 0x1e7   :  { %v468_v2 = vmax.f32 %v420_v62, 0.0  ;;  %v441_v4 = vadd.f32 %v1043_v0, %v1404_v42  ;;  %v482_v8 = vpack.c.bf16 %v470_v63, %v469_v3  ;;  %1128 = vmatpush3.bf16.msra.mxu1 %v1164_v35 }
 0x1e8   :  { %v432_v5 = vpop.f32.mrf.mxu1 }
 0x1e9   :  { %v481_v6 = vpack.c.bf16 %v468_v2, %v467_v1  ;;  %v433_v7 = vadd.f32 %v1404_v42, %v432_v5  ;;  %1084 = vmatpush3.bf16.msra.mxu0 %v1158_v36  ;;  %v473_v11 = vmax.f32 %v441_v4, 0.0 }
 0x1ea   :  { %v1044_v9 = vpop.f32.mrf.mxu1  ;;  %1085 = vmatprep.subr.bf16.mxu0 %v1159_v37 }
 0x1eb   :  { %v444_v10 = vadd.f32 %v1044_v9, %v1404_v42  ;;  %1069 = vmatprep.mubr.bf16.mxu0 %v481_v6  ;;  %v471_v13 = vmax.f32 %v433_v7, 0.0 }
 0x1ec   :  { %v435_v12 = vpop.f32.mrf.mxu1  ;;  %1070 = vmatmul.mubr.bf16.gmra.mxu0 %v482_v8 }
 0x1ed   :  { %v474_v14 = vmax.f32 %v444_v10, 0.0  ;;  %v436_v15 = vadd.f32 %v1404_v42, %v435_v12  ;;  %1086 = vmatpush3.bf16.msra.mxu0 %v1159_v37 }
 0x1ee   :  { %v1047_v16 = vpop.f32.mrf.mxu1  ;;  %1087 = vmatprep.subr.bf16.mxu0 %v1393_v38 }
 0x1ef   :  { %v472_v17 = vmax.f32 %v436_v15, 0.0  ;;  %v484_v18 = vpack.c.bf16 %v474_v14, %v473_v11  ;;  %v457_v19 = vadd.f32 %v1047_v16, %v1404_v42 }
 0x1f0   :  { %v448_v20 = vpop.f32.mrf.mxu1 }
 0x1f1   :  { %v483_v21 = vpack.c.bf16 %v472_v17, %v471_v13  ;;  %v449_v22 = vadd.f32 %v1404_v42, %v448_v20  ;;  %1088 = vmatpush3.bf16.msra.mxu0 %v1393_v38  ;;  %v477_v25 = vmax.f32 %v457_v19, 0.0  ;;  %v921_v38 = vld [vmem:[%s1441_s6] ss:$0 sm:$0xff] }
 0x1f2   :  { %v1048_v23 = vpop.f32.mrf.mxu1  ;;  %1089 = vmatprep.subr.bf16.mxu0 %v1396_v39 }
 0x1f3   :  { %v460_v24 = vadd.f32 %v1048_v23, %v1404_v42  ;;  %1073 = vmatprep.mubr.bf16.mxu0 %v483_v21  ;;  %v475_v27 = vmax.f32 %v449_v22, 0.0 }
 0x1f4   :  { %v451_v26 = vpop.f32.mrf.mxu1  ;;  %1074 = vmatmul.mubr.bf16.gmra.mxu0 %v484_v18 }
 0x1f5   :  { %v478_v28 = vmax.f32 %v460_v24, 0.0  ;;  %v452_v29 = vadd.f32 %v1404_v42, %v451_v26  ;;  %1090 = vmatpush3.bf16.msra.mxu0 %v1396_v39 }
 0x1f6   :  { %1091 = vmatprep.subr.bf16.mxu0 %v1162_v33 }
 0x1f7   :  { %v476_v30 = vmax.f32 %v452_v29, 0.0  ;;  %v486_v31 = vpack.c.bf16 %v478_v28, %v477_v25 }
 0x1f9   :  { %v485_v32 = vpack.c.bf16 %v476_v30, %v475_v27  ;;  %1092 = vmatpush3.bf16.msra.mxu0 %v1162_v33  ;;  %v930_v30 = vld [vmem:[%s1443_s8] ss:$0 sm:$0xff]  ;;  %s1304_s8 = smov [#allocation11]  }
 0x1fa   :  { %1093 = vmatprep.subr.bf16.mxu0 %v1163_v34  ;;  %s890_s18 = sshll.u32 %s1304_s8, 4  ;;  %s891_s18 = int_to_ptr.vmem [resolvable:$true] %s890_s18 }
 0x1fb   :  { %1077 = vmatprep.mubr.bf16.mxu0 %v485_v32  ;;  %s1267_s19 = scalar_lea.vmem %s891_s18, 16  ;;  %s1271_s20 = scalar_lea.vmem %s891_s18, 32 }
 0x1fc   :  { %1078 = vmatmul.mubr.bf16.gmra.mxu0 %v486_v31  ;;  %p1268_p11 = scmp.ne.s32.totalorder %s891_s18, %s1267_s19  ;;  %p1272_p12 = scmp.lt.s32.totalorder %s891_s18, %s891_s18 }
 0x1fd   :  { %1094 = vmatpush3.bf16.msra.mxu0 %v1163_v34  ;;  %p1273_p13 = scmp.lt.s32.totalorder %s1271_s20, %s1267_s19 }
 0x1fe   :  { %1095 = vmatprep.subr.bf16.mxu0 %v1164_v35 }
 0x1ff   :  { %p1274_p0 = por %p1273_p13, %p1272_p12 }
 0x201   :  { %1096 = vmatpush3.bf16.msra.mxu0 %v1164_v35  ;;  %p1275_p1 = pnand %p1274_p0, %p1268_p11 }
 0x2a4   :  { %v1067_v36 = vpop.f32.mrf.mxu0 }
 0x2a5   :  { %v601_v42 = vadd.f32 %v1067_v36, %v921_v38 }
 0x2a6   :  { %v592_v37 = vpop.f32.mrf.mxu0 }
 0x2a7   :  { %v593_v40 = vadd.f32 %v921_v38, %v592_v37  ;;  %v657_v49 = vmax.f32 %v601_v42, 0.0 }
 0x2a8   :  { %v1068_v39 = vpop.f32.mrf.mxu0 }
 0x2a9   :  { %v604_v41 = vadd.f32 %v1068_v39, %v921_v38  ;;  %v655_v47 = vmax.f32 %v593_v40, 0.0 }
 0x2aa   :  { %v595_v43 = vpop.f32.mrf.mxu0 }
 0x2ab   :  { %v596_v44 = vadd.f32 %v921_v38, %v595_v43  ;;  %v658_v45 = vmax.f32 %v604_v41, 0.0 }
 0x2ac   :  { %v1071_v46 = vpop.f32.mrf.mxu0 }
 0x2ad   :  { %v656_v48 = vmax.f32 %v596_v44, 0.0  ;;  %v672_v52 = vpack.c.bf16 %v658_v45, %v657_v49  ;;  %v617_v56 = vadd.f32 %v1071_v46, %v921_v38 }
 0x2ae   :  { %v608_v50 = vpop.f32.mrf.mxu0 }
 0x2af   :  { %v671_v51 = vpack.c.bf16 %v656_v48, %v655_v47  ;;  %v609_v54 = vadd.f32 %v921_v38, %v608_v50  ;;  %v661_v63 = vmax.f32 %v617_v56, 0.0 }
 0x2b0   :  { %v1072_v53 = vpop.f32.mrf.mxu0 }
 0x2b1   :  { %v620_v55 = vadd.f32 %v1072_v53, %v921_v38  ;;  %1097 = vmatprep.mubr.bf16.mxu0 %v671_v51  ;;  %v659_v61 = vmax.f32 %v609_v54, 0.0 }
 0x2b2   :  { %v611_v57 = vpop.f32.mrf.mxu0  ;;  %1098 = vmatmul.mubr.bf16.vlgmr.msra.gmra.mxu0 %v672_v52 }
 0x2b3   :  { %v612_v58 = vadd.f32 %v921_v38, %v611_v57  ;;  %v662_v59 = vmax.f32 %v620_v55, 0.0 }
 0x2b4   :  { %v1075_v60 = vpop.f32.mrf.mxu0 }
 0x2b5   :  { %v660_v62 = vmax.f32 %v612_v58, 0.0  ;;  %v674_v2 = vpack.c.bf16 %v662_v59, %v661_v63  ;;  %v633_v6 = vadd.f32 %v1075_v60, %v921_v38 }
 0x2b6   :  { %v624_v0 = vpop.f32.mrf.mxu0 }
 0x2b7   :  { %v673_v1 = vpack.c.bf16 %v660_v62, %v659_v61  ;;  %v625_v4 = vadd.f32 %v921_v38, %v624_v0  ;;  %v665_v13 = vmax.f32 %v633_v6, 0.0 }
 0x2b8   :  { %v1076_v3 = vpop.f32.mrf.mxu0 }
 0x2b9   :  { %v636_v5 = vadd.f32 %v1076_v3, %v921_v38  ;;  %1101 = vmatprep.mubr.bf16.mxu1 %v673_v1  ;;  %v663_v11 = vmax.f32 %v625_v4, 0.0 }
 0x2ba   :  { %v627_v7 = vpop.f32.mrf.mxu0  ;;  %1102 = vmatmul.mubr.bf16.vlgmr.msra.gmra.mxu1 %v674_v2 }
 0x2bb   :  { %v628_v8 = vadd.f32 %v921_v38, %v627_v7  ;;  %v666_v9 = vmax.f32 %v636_v5, 0.0 }
 0x2bc   :  { %v1079_v10 = vpop.f32.mrf.mxu0 }
 0x2bd   :  { %v664_v12 = vmax.f32 %v628_v8, 0.0  ;;  %v649_v14 = vadd.f32 %v1079_v10, %v921_v38  ;;  %v676_v18 = vpack.c.bf16 %v666_v9, %v665_v13 }
 0x2be   :  { %v640_v15 = vpop.f32.mrf.mxu0 }
 0x2bf   :  { %v675_v16 = vpack.c.bf16 %v664_v12, %v663_v11  ;;  %v641_v17 = vadd.f32 %v921_v38, %v640_v15  ;;  %v669_v21 = vmax.f32 %v649_v14, 0.0 }
 0x2c0   :  { %v1080_v19 = vpop.f32.mrf.mxu0 }
 0x2c1   :  { %v652_v20 = vadd.f32 %v1080_v19, %v921_v38  ;;  %1105 = vmatprep.mubr.bf16.mxu1 %v675_v16  ;;  %v667_v23 = vmax.f32 %v641_v17, 0.0 }
 0x2c2   :  { %v643_v22 = vpop.f32.mrf.mxu0  ;;  %1106 = vmatmul.mubr.bf16.gmra.mxu1 %v676_v18 }
 0x2c3   :  { %v670_v24 = vmax.f32 %v652_v20, 0.0  ;;  %v644_v25 = vadd.f32 %v921_v38, %v643_v22 }
 0x2c5   :  { %v668_v26 = vmax.f32 %v644_v25, 0.0  ;;  %v678_v27 = vpack.c.bf16 %v670_v24, %v669_v21 }
 0x2c7   :  { %v677_v28 = vpack.c.bf16 %v668_v26, %v667_v23 }
 0x2c9   :  { %1109 = vmatprep.mubr.bf16.mxu1 %v677_v28 }
 0x2ca   :  { %1110 = vmatmul.mubr.bf16.gmra.mxu1 %v678_v27 }
 0x372   :  { %v1099_v29 = vpop.f32.mrf.mxu0 }
 0x373   :  { %v793_v37 = vadd.f32 %v1099_v29, %v930_v30 }
 0x374   :  { %v784_v31 = vpop.f32.mrf.mxu0 }
 0x375   :  { %v785_v32 = vadd.f32 %v930_v30, %v784_v31 }
 0x376   :  { %v1100_v33 = vpop.f32.mrf.mxu0 }
 0x377   :  { %847 = vxpose.xlu0.b32.start [1/16] (narrow) %v785_v32, 8  ;;  %v796_v39 = vadd.f32 %v1100_v33, %v930_v30 }
 0x378   :  { %v787_v34 = vpop.f32.mrf.mxu0 }
 0x379   :  { %v788_v35 = vadd.f32 %v930_v30, %v787_v34 }
 0x37a   :  { %v1103_v36 = vpop.f32.mrf.mxu1 }
 0x37b   :  { %848 = vxpose.xlu0.b32.cont [2/16] (narrow) %v788_v35, 8  ;;  %v809_v45 = vadd.f32 %v1103_v36, %v930_v30 }
 0x37c   :  { %v800_v38 = vpop.f32.mrf.mxu1 }
 0x37d   :  { %v801_v41 = vadd.f32 %v930_v30, %v800_v38 }
 0x37e   :  { %v1104_v40 = vpop.f32.mrf.mxu1 }
 0x37f   :  { %849 = vxpose.xlu0.b32.cont [3/16] (narrow) %v793_v37, 8  ;;  %v812_v47 = vadd.f32 %v1104_v40, %v930_v30 }
 0x380   :  { %v803_v42 = vpop.f32.mrf.mxu1 }
 0x381   :  { %v804_v43 = vadd.f32 %v930_v30, %v803_v42 }
 0x382   :  { %v1107_v44 = vpop.f32.mrf.mxu1 }
 0x383   :  { %850 = vxpose.xlu0.b32.cont [4/16] (narrow) %v796_v39, 8  ;;  %v825_v53 = vadd.f32 %v1107_v44, %v930_v30 }
 0x384   :  { %v816_v46 = vpop.f32.mrf.mxu1 }
 0x385   :  { %v817_v49 = vadd.f32 %v930_v30, %v816_v46 }
 0x386   :  { %v1108_v48 = vpop.f32.mrf.mxu1 }
 0x387   :  { %851 = vxpose.xlu0.b32.cont [5/16] (narrow) %v801_v41, 8  ;;  %v828_v55 = vadd.f32 %v1108_v48, %v930_v30 }
 0x388   :  { %v819_v50 = vpop.f32.mrf.mxu1 }
 0x389   :  { %v820_v51 = vadd.f32 %v930_v30, %v819_v50 }
 0x38a   :  { %v1111_v52 = vpop.f32.mrf.mxu1 }
 0x38b   :  { %852 = vxpose.xlu0.b32.cont [6/16] (narrow) %v804_v43, 8  ;;  %v841_v60 = vadd.f32 %v1111_v52, %v930_v30 }
 0x38c   :  { %v832_v54 = vpop.f32.mrf.mxu1 }
 0x38d   :  { %v833_v57 = vadd.f32 %v930_v30, %v832_v54 }
 0x38e   :  { %v1112_v56 = vpop.f32.mrf.mxu1 }
 0x38f   :  { %853 = vxpose.xlu0.b32.cont [7/16] (narrow) %v809_v45, 8  ;;  %v844_v61 = vadd.f32 %v1112_v56, %v930_v30 }
 0x390   :  { %v835_v58 = vpop.f32.mrf.mxu1 }
 0x391   :  { %v836_v59 = vadd.f32 %v930_v30, %v835_v58 }
 0x393   :  { %854 = vxpose.xlu0.b32.cont [8/16] (narrow) %v812_v47, 8 }
 0x397   :  { %855 = vxpose.xlu0.b32.cont [9/16] (narrow) %v817_v49, 8 }
 0x39b   :  { %856 = vxpose.xlu0.b32.cont [10/16] (narrow) %v820_v51, 8 }
 0x39f   :  { %857 = vxpose.xlu0.b32.cont [11/16] (narrow) %v825_v53, 8 }
 0x3a3   :  { %858 = vxpose.xlu0.b32.cont [12/16] (narrow) %v828_v55, 8 }
 0x3a7   :  { %859 = vxpose.xlu0.b32.cont [13/16] (narrow) %v833_v57, 8 }
 0x3ab   :  { %860 = vxpose.xlu0.b32.cont [14/16] (narrow) %v836_v59, 8 }
 0x3af   :  { %861 = vxpose.xlu0.b32.cont [15/16] (narrow) %v841_v60, 8 }
 0x3b3   :  { %862 = vxpose.xlu0.b32.end [16/16] (narrow) %v844_v61, 8 }
 0x3f3   :  { %v863_v62 = vpop.trf.xlu0 }
 0x3f4   :  { %v879_v63 = vmul.f32 0.5, %v863_v62 }
 0x3f6   :  { %1165 = vtanh.f32 %v879_v63 }
 0x403   :  { %v1166_v0 = vpop.eup %1165 }
 0x404   :  { %v881_v1 = vadd.f32 1.0, %v1166_v0 }
 0x406   :  { %v882_v2 = vmul.f32 0.5, %v881_v1 }
 0x408   :  { %883 = vst [vmem:[#allocation11] sm:$0x1] %v882_v2 }
 0x409   :  { %1278 = shalt.err (!%p1275_p1)
}
 0x40a   :  { %893 = dma.vmem_to_hbm [thread:$0]  %s891_s18, 16, %s1444_s9, [#allocation4]  }
 0x40b   :  { %1293 = dma.done.wait [#allocation4], 16  }
 0x40c   :  { %1294 = vsyncadd [#allocation4], 4294967280 }
 0x40d   :  { %897 = vsyncpa [#allocation3], 1 }
 0x40e   :  { %898 = vsyncpa [#allocation6], 1 }
 0x40f   :  { %899 = vsyncpa [#allocation9], 1 }
 0x410   :  { %900 = vsyncpa [#allocation4], 1 }

</bundles_post_ra>
